<compile_context>
chip_gen: v6e
topology: v6e:2x2x1
jax: 0.10.0
libtpu: 0.0.40
codegen_flags: <defaults>
</compile_context>

<pallas_src>
import functools

import jax
import jax.numpy as jnp
from jax import lax
from jax.experimental import pallas as pl
from jax.experimental.pallas import tpu as pltpu


# ----------------------------------------------------------------------------
# In-kernel exact GELU (erf via A&S 7.1.26 polynomial; only exp/mul/add/where).
# ----------------------------------------------------------------------------
def _erf_poly(z):
    a1, a2, a3, a4, a5 = (0.254829592, -0.284496736, 1.421413741,
                          -1.453152027, 1.061405429)
    p = 0.3275911
    za = jnp.abs(z)
    t = 1.0 / (1.0 + p * za)
    poly = ((((a5 * t + a4) * t + a3) * t + a2) * t + a1) * t
    e = 1.0 - poly * jnp.exp(-za * za)
    return jnp.where(z >= 0.0, e, -e)


def _gelu_exact(x):
    # matches torch.nn.functional.gelu default (erf form)
    return 0.5 * x * (1.0 + _erf_poly(x * 0.7071067811865476))


# ----------------------------------------------------------------------------
# Kernel 1: per-mode complex channel mixing, modes on the lane axis.
#   zr/zi : (1, Ci, tm)   real/imag of retained modes for one batch element
#   wr/wi : (Ci, Co, tm)  real/imag spectral weights
#   ur/ui : (1, Co, tm)   out[o, m] = sum_i z[i, m] * w[i, o, m]   (complex)
# 4-multiply complex form -> only 2 f32 accumulators of shape (1, Co, tm).
# ----------------------------------------------------------------------------
def spectral_mix_kernel(zr_ref, zi_ref, wr_ref, wi_ref, ur_ref, ui_ref):
    ci, co, tm = wr_ref.shape
    acc_r = jnp.zeros((1, co, tm), jnp.float32)
    acc_i = jnp.zeros((1, co, tm), jnp.float32)

    def body(i, accs):
        acc_r, acc_i = accs
        zr_i = zr_ref[:, pl.ds(i, 1), :]      # (1, 1, tm) -> sublane-broadcast
        zi_i = zi_ref[:, pl.ds(i, 1), :]
        wr_i = wr_ref[pl.ds(i, 1), :, :]      # (1, Co, tm)
        wi_i = wi_ref[pl.ds(i, 1), :, :]
        acc_r = acc_r + (zr_i * wr_i - zi_i * wi_i)
        acc_i = acc_i + (zr_i * wi_i + zi_i * wr_i)
        return acc_r, acc_i

    if ci <= 16:
        # small widths: fully unrolled static slices
        for i in range(ci):
            acc_r, acc_i = body(i, (acc_r, acc_i))
    else:
        # large widths: bounded live ranges, partial unroll
        acc_r, acc_i = lax.fori_loop(0, ci, body, (acc_r, acc_i),
                                     unroll=min(8, ci))

    ur_ref[...] = acc_r
    ui_ref[...] = acc_i


def spectral_mix(zr, zi, wr, wi, *, tm=256,
                 vmem_limit_bytes=48 * 1024 * 1024):
    """zr/zi: (B, Ci, M), wr/wi: (Ci, Co, M) -> (uR, uI): (B, Co, M) f32."""
    B, Ci, M = zr.shape
    Co = wr.shape[1]
    if M <= 128:
        tm_eff = M                         # single block equal to full mode dim
    else:
        tm_eff = max(128, (min(tm, M) // 128) * 128)
    grid = (B, pl.cdiv(M, tm_eff))         # ragged last mode tile is masked

    z_spec = pl.BlockSpec((1, Ci, tm_eff), lambda b, m: (b, 0, m))
    w_spec = pl.BlockSpec((Ci, Co, tm_eff), lambda b, m: (0, 0, m))
    o_spec = pl.BlockSpec((1, Co, tm_eff), lambda b, m: (b, 0, m))

    return pl.pallas_call(
        spectral_mix_kernel,
        grid=grid,
        in_specs=[z_spec, z_spec, w_spec, w_spec],
        out_specs=(o_spec, o_spec),
        out_shape=(jax.ShapeDtypeStruct((B, Co, M), jnp.float32),
                   jax.ShapeDtypeStruct((B, Co, M), jnp.float32)),
        compiler_params=pltpu.CompilerParams(
            dimension_semantics=("parallel", "parallel"),
            vmem_limit_bytes=vmem_limit_bytes),
    )(zr, zi, wr, wi)


# ----------------------------------------------------------------------------
# Kernel 2: 1x1 conv (channel matmul) + bias + residual add + exact GELU.
# Works directly on (B, C, S) with S = X*T (no transposes in the wrapper):
#   x_ref/x1_ref : (1, C, tn)   lane-dense flattened spatial tile
#   w_ref        : (C, C)       conv weight (out, in)  -> y = W @ x
#   b_ref        : (C, 1)       conv bias (lane-broadcast)
# ----------------------------------------------------------------------------
def pw_residual_gelu_kernel(x_ref, x1_ref, w_ref, b_ref, o_ref, *, apply_gelu):
    y = jnp.dot(w_ref[...], x_ref[0], preferred_element_type=jnp.float32)
    y = y + b_ref[...] + x1_ref[0]
    if apply_gelu:
        y = _gelu_exact(y)
    o_ref[0] = y


def pointwise_residual_gelu(x3, x13, w, b2, *, apply_gelu, tn=4096,
                            vmem_limit_bytes=32 * 1024 * 1024):
    """x3/x13: (B, C, S); w: (C, C); b2: (C, 1) -> (B, C, S) f32."""
    B, C, S = x3.shape
    if S <= 128:
        tn_eff = S
    else:
        tn_eff = max(128, (min(tn, ((S + 127) // 128) * 128) // 128) * 128)
    grid = (B, pl.cdiv(S, tn_eff))          # ragged spatial tail is masked

    kernel = functools.partial(pw_residual_gelu_kernel, apply_gelu=apply_gelu)
    return pl.pallas_call(
        kernel,
        grid=grid,
        in_specs=[
            pl.BlockSpec((1, C, tn_eff), lambda b, i: (b, 0, i)),
            pl.BlockSpec((1, C, tn_eff), lambda b, i: (b, 0, i)),
            pl.BlockSpec((C, C), lambda b, i: (0, 0)),
            pl.BlockSpec((C, 1), lambda b, i: (0, 0)),
        ],
        out_specs=pl.BlockSpec((1, C, tn_eff), lambda b, i: (b, 0, i)),
        out_shape=jax.ShapeDtypeStruct((B, C, S), jnp.float32),
        compiler_params=pltpu.CompilerParams(
            dimension_semantics=("parallel", "parallel"),
            vmem_limit_bytes=vmem_limit_bytes),
    )(x3, x13, w, b2)


# ----------------------------------------------------------------------------
# One-time parameter preparation (hoisted out of the forward pass).
# Packs spectral weights as real/imag (Ci, Co, M) slabs (mode order (kx, kt),
# kt minor) and builds the truncated real DFT matrices.
# ----------------------------------------------------------------------------
def prepare_fno_params(params, *, X, T, modes1, modes2):
    C = params["conv_w"].shape[0]
    m1, m2 = modes1, modes2
    assert 2 * m1 <= X and m2 <= T // 2 + 1
    M = 2 * m1 * m2

    w = jnp.concatenate([params["w1"], params["w2"]], axis=2).reshape(C, C, M)
    wr = jnp.real(w).astype(jnp.float32)
    wi = jnp.imag(w).astype(jnp.float32)

    tt = jnp.arange(T, dtype=jnp.float32)
    kt = jnp.arange(m2, dtype=jnp.float32)
    ang_t = (2.0 * jnp.pi / T) * tt[:, None] * kt[None, :]          # (T, m2)

    xx = jnp.arange(X, dtype=jnp.float32)
    kx = jnp.concatenate([jnp.arange(m1), jnp.arange(X - m1, X)]).astype(jnp.float32)
    ang_x = (2.0 * jnp.pi / X) * xx[:, None] * kx[None, :]          # (X, 2*m1)

    # irfft Hermitian weights: 1 for DC (and Nyquist if included), else 2
    ck = jnp.asarray([1.0 if (k == 0 or (T % 2 == 0 and k == T // 2)) else 2.0
                      for k in range(m2)], dtype=jnp.float32)

    return {
        "wr": wr, "wi": wi,
        # forward truncated DFT:  exp(-2*pi*i * k * n / N)
        "ftr": jnp.cos(ang_t), "fti": -jnp.sin(ang_t),               # (T, m2)
        "fxr": jnp.cos(ang_x), "fxi": -jnp.sin(ang_x),               # (X, 2*m1)
        # inverse DFT over the kept kx rows: exp(+2*pi*i * k * x / X) / X
        "gxr": jnp.cos(ang_x).T / X, "gxi": jnp.sin(ang_x).T / X,    # (2*m1, X)
        # inverse real DFT over kt (irfft of a half-spectrum, only kt<m2 nonzero)
        "gtr": (ck[:, None] * jnp.cos(ang_t).T) / T,                 # (m2, T)
        "gti": -(ck[:, None] * jnp.sin(ang_t).T) / T,
        "conv_w": params["conv_w"].astype(jnp.float32),
        "conv_b": params["conv_b"].astype(jnp.float32).reshape(C, 1),
    }


# ----------------------------------------------------------------------------
# FNO_layer forward
# ----------------------------------------------------------------------------
def fno_layer_forward(x, prep, *, modes1, modes2, last=False):
    """x: (batch, width, dim_x, dim_t) float32."""
    B, C, X, T = x.shape
    J = 2 * modes1
    M = J * modes2
    HI = jax.lax.Precision.HIGHEST
    xf = x.astype(jnp.float32)

    # --- truncated forward DFT (t axis, then x axis), real arithmetic ---
    # TODO(synk): these contractions are XLA einsums on the MXU, not Pallas.
    yR = jnp.einsum("bcxt,tk->bcxk", xf, prep["ftr"], precision=HI)
    yI = jnp.einsum("bcxt,tk->bcxk", xf, prep["fti"], precision=HI)
    zR = (jnp.einsum("bcxk,xj->bcjk", yR, prep["fxr"], precision=HI)
          - jnp.einsum("bcxk,xj->bcjk", yI, prep["fxi"], precision=HI))
    zI = (jnp.einsum("bcxk,xj->bcjk", yR, prep["fxi"], precision=HI)
          + jnp.einsum("bcxk,xj->bcjk", yI, prep["fxr"], precision=HI))
    zR = zR.reshape(B, C, M)                    # contiguous (kx, kt) flatten
    zI = zI.reshape(B, C, M)

    # --- per-mode complex channel mixing (Pallas, modes on lanes) ---
    uR, uI = spectral_mix(zR, zI, prep["wr"], prep["wi"])

    # --- truncated inverse DFT (x axis, then real t axis) ---
    uR = uR.reshape(B, C, J, modes2)
    uI = uI.reshape(B, C, J, modes2)
    hR = (jnp.einsum("bojk,jx->boxk", uR, prep["gxr"], precision=HI)
          - jnp.einsum("bojk,jx->boxk", uI, prep["gxi"], precision=HI))
    hI = (jnp.einsum("bojk,jx->boxk", uR, prep["gxi"], precision=HI)
          + jnp.einsum("bojk,jx->boxk", uI, prep["gxr"], precision=HI))
    x1 = (jnp.einsum("boxk,kt->boxt", hR, prep["gtr"], precision=HI)
          + jnp.einsum("boxk,kt->boxt", hI, prep["gti"], precision=HI))

    # --- 1x1 conv + bias + residual + GELU (Pallas, no transposes) ---
    S = X * T
    y = pointwise_residual_gelu(
        xf.reshape(B, C, S), x1.reshape(B, C, S),
        prep["conv_w"], prep["conv_b"], apply_gelu=not last)
    return y.reshape(B, C, X, T)


# ----------------------------------------------------------------------------
# Pure-JAX reference (mirrors the PyTorch module) for verification.
# ----------------------------------------------------------------------------
def fno_layer_reference(x, params, *, modes1, modes2, last=False):
    B, C, X, T = x.shape
    Tf = T // 2 + 1
    x_ft = jnp.fft.rfft2(x)
    out_ft = jnp.zeros((B, C, X, Tf), dtype=jnp.complex64)
    out_ft = out_ft.at[:, :, :modes1, :modes2].set(
        jnp.einsum("bixt,ioxt->boxt", x_ft[:, :, :modes1, :modes2], params["w1"]))
    out_ft = out_ft.at[:, :, X - modes1:, :modes2].set(
        jnp.einsum("bixt,ioxt->boxt", x_ft[:, :, X - modes1:, :modes2], params["w2"]))
    x1 = jnp.fft.irfft2(out_ft, s=(X, T)).astype(jnp.float32)
    x2 = jnp.einsum("oi,bixt->boxt", params["conv_w"], x) + \
        params["conv_b"][None, :, None, None]
    y = x1 + x2
    if not last:
        y = jax.nn.gelu(y, approximate=False)
    return y


if __name__ == "__main__":
    # Keep all matmuls (in- and out-of-kernel, and the reference) in true f32
    # so the truncated-DFT path can be compared tightly against jnp.fft.
    jax.config.update("jax_default_matmul_precision", "highest")

    B, width, X, T = 2, 8, 16, 16
    modes1, modes2 = 4, 4

    key = jax.random.PRNGKey(0)
    k_x, k1r, k1i, k2r, k2i, kw, kb = jax.random.split(key, 7)

    x = jax.random.normal(k_x, (B, width, X, T), dtype=jnp.float32)

    scale = 1.0 / (width * width)
    params = {
        # SpectralConv2d weights: complex, uniform [0,1) * scale (torch.rand cfloat)
        "w1": (scale * jax.random.uniform(k1r, (width, width, modes1, modes2))
               + 1j * scale * jax.random.uniform(k1i, (width, width, modes1, modes2))
               ).astype(jnp.complex64),
        "w2": (scale * jax.random.uniform(k2r, (width, width, modes1, modes2))
               + 1j * scale * jax.random.uniform(k2i, (width, width, modes1, modes2))
               ).astype(jnp.complex64),
        # nn.Conv2d(width, width, 1): weight (out, in), bias (out,)
        "conv_w": (0.1 * jax.random.normal(kw, (width, width))).astype(jnp.float32),
        "conv_b": (0.1 * jax.random.normal(kb, (width,))).astype(jnp.float32),
    }

    # One-time parameter preparation (weight packing + truncated DFT matrices).
    prep = prepare_fno_params(params, X=X, T=T, modes1=modes1, modes2=modes2)

    run = jax.jit(functools.partial(fno_layer_forward,
                                    modes1=modes1, modes2=modes2, last=False))
    out = jax.block_until_ready(run(x, prep))

    ref = fno_layer_reference(x, params, modes1=modes1, modes2=modes2, last=False)
    assert out.shape == (B, width, X, T)
    err = float(jnp.max(jnp.abs(out - ref)))
    assert err < 2e-4, f"max abs err = {err}"

    print("KERNEL_OK")
</pallas_src>

<mosaic_0001>
module attributes {stable_mosaic.version = 11 : i64} {
  func.func @spectral_mix_kernel(%arg0: i32, %arg1: i32, %arg2: memref<1x8x32xf32, #tpu.memory_space<vmem>>, %arg3: memref<1x8x32xf32, #tpu.memory_space<vmem>>, %arg4: memref<8x8x32xf32, #tpu.memory_space<vmem>>, %arg5: memref<8x8x32xf32, #tpu.memory_space<vmem>>, %arg6: memref<1x8x32xf32, #tpu.memory_space<vmem>>, %arg7: memref<1x8x32xf32, #tpu.memory_space<vmem>>) attributes {dimension_semantics = [#tpu.dimension_semantics<parallel>, #tpu.dimension_semantics<parallel>], iteration_bounds = array<i64: 2, 1>, scalar_prefetch = 0 : i64, scratch_operands = 0 : i64, tpu.core_type = #tpu.core_type<tc>, window_params = [{transform_indices = @transform_0, window_bounds = array<i64: 1, 8, 32>}, {transform_indices = @transform_1, window_bounds = array<i64: 1, 8, 32>}, {transform_indices = @transform_2, window_bounds = array<i64: 8, 8, 32>}, {transform_indices = @transform_3, window_bounds = array<i64: 8, 8, 32>}, {transform_indices = @transform_4, window_bounds = array<i64: 1, 8, 32>}, {transform_indices = @transform_5, window_bounds = array<i64: 1, 8, 32>}]} {
    %cst = arith.constant 0.000000e+00 : f32
    %0 = vector.broadcast %cst : f32 to vector<1x8x32xf32>
    %cst_0 = arith.constant 0.000000e+00 : f32
    %1 = vector.broadcast %cst_0 : f32 to vector<1x8x32xf32>
    %c0 = arith.constant 0 : index
    %c0_1 = arith.constant 0 : index
    %c0_2 = arith.constant 0 : index
    %2 = vector.load %arg2[%c0, %c0_1, %c0_2] : memref<1x8x32xf32, #tpu.memory_space<vmem>>, vector<1x1x32xf32>
    %c0_3 = arith.constant 0 : index
    %c0_4 = arith.constant 0 : index
    %c0_5 = arith.constant 0 : index
    %3 = vector.load %arg3[%c0_3, %c0_4, %c0_5] : memref<1x8x32xf32, #tpu.memory_space<vmem>>, vector<1x1x32xf32>
    %c0_6 = arith.constant 0 : index
    %c0_7 = arith.constant 0 : index
    %c0_8 = arith.constant 0 : index
    %4 = vector.load %arg4[%c0_6, %c0_7, %c0_8] : memref<8x8x32xf32, #tpu.memory_space<vmem>>, vector<1x8x32xf32>
    %c0_9 = arith.constant 0 : index
    %c0_10 = arith.constant 0 : index
    %c0_11 = arith.constant 0 : index
    %5 = vector.load %arg5[%c0_9, %c0_10, %c0_11] : memref<8x8x32xf32, #tpu.memory_space<vmem>>, vector<1x8x32xf32>
    %6 = vector.broadcast %2 : vector<1x1x32xf32> to vector<1x8x32xf32>
    %7 = arith.mulf %6, %4 : vector<1x8x32xf32>
    %8 = vector.broadcast %3 : vector<1x1x32xf32> to vector<1x8x32xf32>
    %9 = arith.mulf %8, %5 : vector<1x8x32xf32>
    %10 = arith.subf %7, %9 : vector<1x8x32xf32>
    %11 = arith.addf %0, %10 : vector<1x8x32xf32>
    %12 = vector.broadcast %2 : vector<1x1x32xf32> to vector<1x8x32xf32>
    %13 = arith.mulf %12, %5 : vector<1x8x32xf32>
    %14 = vector.broadcast %3 : vector<1x1x32xf32> to vector<1x8x32xf32>
    %15 = arith.mulf %14, %4 : vector<1x8x32xf32>
    %16 = arith.addf %13, %15 : vector<1x8x32xf32>
    %17 = arith.addf %1, %16 : vector<1x8x32xf32>
    %c0_12 = arith.constant 0 : index
    %c1 = arith.constant 1 : index
    %c0_13 = arith.constant 0 : index
    %18 = vector.load %arg2[%c0_12, %c1, %c0_13] : memref<1x8x32xf32, #tpu.memory_space<vmem>>, vector<1x1x32xf32>
    %c0_14 = arith.constant 0 : index
    %c1_15 = arith.constant 1 : index
    %c0_16 = arith.constant 0 : index
    %19 = vector.load %arg3[%c0_14, %c1_15, %c0_16] : memref<1x8x32xf32, #tpu.memory_space<vmem>>, vector<1x1x32xf32>
    %c1_17 = arith.constant 1 : index
    %c0_18 = arith.constant 0 : index
    %c0_19 = arith.constant 0 : index
    %20 = vector.load %arg4[%c1_17, %c0_18, %c0_19] : memref<8x8x32xf32, #tpu.memory_space<vmem>>, vector<1x8x32xf32>
    %c1_20 = arith.constant 1 : index
    %c0_21 = arith.constant 0 : index
    %c0_22 = arith.constant 0 : index
    %21 = vector.load %arg5[%c1_20, %c0_21, %c0_22] : memref<8x8x32xf32, #tpu.memory_space<vmem>>, vector<1x8x32xf32>
    %22 = vector.broadcast %18 : vector<1x1x32xf32> to vector<1x8x32xf32>
    %23 = arith.mulf %22, %20 : vector<1x8x32xf32>
    %24 = vector.broadcast %19 : vector<1x1x32xf32> to vector<1x8x32xf32>
    %25 = arith.mulf %24, %21 : vector<1x8x32xf32>
    %26 = arith.subf %23, %25 : vector<1x8x32xf32>
    %27 = arith.addf %11, %26 : vector<1x8x32xf32>
    %28 = vector.broadcast %18 : vector<1x1x32xf32> to vector<1x8x32xf32>
    %29 = arith.mulf %28, %21 : vector<1x8x32xf32>
    %30 = vector.broadcast %19 : vector<1x1x32xf32> to vector<1x8x32xf32>
    %31 = arith.mulf %30, %20 : vector<1x8x32xf32>
    %32 = arith.addf %29, %31 : vector<1x8x32xf32>
    %33 = arith.addf %17, %32 : vector<1x8x32xf32>
    %c0_23 = arith.constant 0 : index
    %c2 = arith.constant 2 : index
    %c0_24 = arith.constant 0 : index
    %34 = vector.load %arg2[%c0_23, %c2, %c0_24] : memref<1x8x32xf32, #tpu.memory_space<vmem>>, vector<1x1x32xf32>
    %c0_25 = arith.constant 0 : index
    %c2_26 = arith.constant 2 : index
    %c0_27 = arith.constant 0 : index
    %35 = vector.load %arg3[%c0_25, %c2_26, %c0_27] : memref<1x8x32xf32, #tpu.memory_space<vmem>>, vector<1x1x32xf32>
    %c2_28 = arith.constant 2 : index
    %c0_29 = arith.constant 0 : index
    %c0_30 = arith.constant 0 : index
    %36 = vector.load %arg4[%c2_28, %c0_29, %c0_30] : memref<8x8x32xf32, #tpu.memory_space<vmem>>, vector<1x8x32xf32>
    %c2_31 = arith.constant 2 : index
    %c0_32 = arith.constant 0 : index
    %c0_33 = arith.constant 0 : index
    %37 = vector.load %arg5[%c2_31, %c0_32, %c0_33] : memref<8x8x32xf32, #tpu.memory_space<vmem>>, vector<1x8x32xf32>
    %38 = vector.broadcast %34 : vector<1x1x32xf32> to vector<1x8x32xf32>
    %39 = arith.mulf %38, %36 : vector<1x8x32xf32>
    %40 = vector.broadcast %35 : vector<1x1x32xf32> to vector<1x8x32xf32>
    %41 = arith.mulf %40, %37 : vector<1x8x32xf32>
    %42 = arith.subf %39, %41 : vector<1x8x32xf32>
    %43 = arith.addf %27, %42 : vector<1x8x32xf32>
    %44 = vector.broadcast %34 : vector<1x1x32xf32> to vector<1x8x32xf32>
    %45 = arith.mulf %44, %37 : vector<1x8x32xf32>
    %46 = vector.broadcast %35 : vector<1x1x32xf32> to vector<1x8x32xf32>
    %47 = arith.mulf %46, %36 : vector<1x8x32xf32>
    %48 = arith.addf %45, %47 : vector<1x8x32xf32>
    %49 = arith.addf %33, %48 : vector<1x8x32xf32>
    %c0_34 = arith.constant 0 : index
    %c3 = arith.constant 3 : index
    %c0_35 = arith.constant 0 : index
    %50 = vector.load %arg2[%c0_34, %c3, %c0_35] : memref<1x8x32xf32, #tpu.memory_space<vmem>>, vector<1x1x32xf32>
    %c0_36 = arith.constant 0 : index
    %c3_37 = arith.constant 3 : index
    %c0_38 = arith.constant 0 : index
    %51 = vector.load %arg3[%c0_36, %c3_37, %c0_38] : memref<1x8x32xf32, #tpu.memory_space<vmem>>, vector<1x1x32xf32>
    %c3_39 = arith.constant 3 : index
    %c0_40 = arith.constant 0 : index
    %c0_41 = arith.constant 0 : index
    %52 = vector.load %arg4[%c3_39, %c0_40, %c0_41] : memref<8x8x32xf32, #tpu.memory_space<vmem>>, vector<1x8x32xf32>
    %c3_42 = arith.constant 3 : index
    %c0_43 = arith.constant 0 : index
    %c0_44 = arith.constant 0 : index
    %53 = vector.load %arg5[%c3_42, %c0_43, %c0_44] : memref<8x8x32xf32, #tpu.memory_space<vmem>>, vector<1x8x32xf32>
    %54 = vector.broadcast %50 : vector<1x1x32xf32> to vector<1x8x32xf32>
    %55 = arith.mulf %54, %52 : vector<1x8x32xf32>
    %56 = vector.broadcast %51 : vector<1x1x32xf32> to vector<1x8x32xf32>
    %57 = arith.mulf %56, %53 : vector<1x8x32xf32>
    %58 = arith.subf %55, %57 : vector<1x8x32xf32>
    %59 = arith.addf %43, %58 : vector<1x8x32xf32>
    %60 = vector.broadcast %50 : vector<1x1x32xf32> to vector<1x8x32xf32>
    %61 = arith.mulf %60, %53 : vector<1x8x32xf32>
    %62 = vector.broadcast %51 : vector<1x1x32xf32> to vector<1x8x32xf32>
    %63 = arith.mulf %62, %52 : vector<1x8x32xf32>
    %64 = arith.addf %61, %63 : vector<1x8x32xf32>
    %65 = arith.addf %49, %64 : vector<1x8x32xf32>
    %c0_45 = arith.constant 0 : index
    %c4 = arith.constant 4 : index
    %c0_46 = arith.constant 0 : index
    %66 = vector.load %arg2[%c0_45, %c4, %c0_46] : memref<1x8x32xf32, #tpu.memory_space<vmem>>, vector<1x1x32xf32>
    %c0_47 = arith.constant 0 : index
    %c4_48 = arith.constant 4 : index
    %c0_49 = arith.constant 0 : index
    %67 = vector.load %arg3[%c0_47, %c4_48, %c0_49] : memref<1x8x32xf32, #tpu.memory_space<vmem>>, vector<1x1x32xf32>
    %c4_50 = arith.constant 4 : index
    %c0_51 = arith.constant 0 : index
    %c0_52 = arith.constant 0 : index
    %68 = vector.load %arg4[%c4_50, %c0_51, %c0_52] : memref<8x8x32xf32, #tpu.memory_space<vmem>>, vector<1x8x32xf32>
    %c4_53 = arith.constant 4 : index
    %c0_54 = arith.constant 0 : index
    %c0_55 = arith.constant 0 : index
    %69 = vector.load %arg5[%c4_53, %c0_54, %c0_55] : memref<8x8x32xf32, #tpu.memory_space<vmem>>, vector<1x8x32xf32>
    %70 = vector.broadcast %66 : vector<1x1x32xf32> to vector<1x8x32xf32>
    %71 = arith.mulf %70, %68 : vector<1x8x32xf32>
    %72 = vector.broadcast %67 : vector<1x1x32xf32> to vector<1x8x32xf32>
    %73 = arith.mulf %72, %69 : vector<1x8x32xf32>
    %74 = arith.subf %71, %73 : vector<1x8x32xf32>
    %75 = arith.addf %59, %74 : vector<1x8x32xf32>
    %76 = vector.broadcast %66 : vector<1x1x32xf32> to vector<1x8x32xf32>
    %77 = arith.mulf %76, %69 : vector<1x8x32xf32>
    %78 = vector.broadcast %67 : vector<1x1x32xf32> to vector<1x8x32xf32>
    %79 = arith.mulf %78, %68 : vector<1x8x32xf32>
    %80 = arith.addf %77, %79 : vector<1x8x32xf32>
    %81 = arith.addf %65, %80 : vector<1x8x32xf32>
    %c0_56 = arith.constant 0 : index
    %c5 = arith.constant 5 : index
    %c0_57 = arith.constant 0 : index
    %82 = vector.load %arg2[%c0_56, %c5, %c0_57] : memref<1x8x32xf32, #tpu.memory_space<vmem>>, vector<1x1x32xf32>
    %c0_58 = arith.constant 0 : index
    %c5_59 = arith.constant 5 : index
    %c0_60 = arith.constant 0 : index
    %83 = vector.load %arg3[%c0_58, %c5_59, %c0_60] : memref<1x8x32xf32, #tpu.memory_space<vmem>>, vector<1x1x32xf32>
    %c5_61 = arith.constant 5 : index
    %c0_62 = arith.constant 0 : index
    %c0_63 = arith.constant 0 : index
    %84 = vector.load %arg4[%c5_61, %c0_62, %c0_63] : memref<8x8x32xf32, #tpu.memory_space<vmem>>, vector<1x8x32xf32>
    %c5_64 = arith.constant 5 : index
    %c0_65 = arith.constant 0 : index
    %c0_66 = arith.constant 0 : index
    %85 = vector.load %arg5[%c5_64, %c0_65, %c0_66] : memref<8x8x32xf32, #tpu.memory_space<vmem>>, vector<1x8x32xf32>
    %86 = vector.broadcast %82 : vector<1x1x32xf32> to vector<1x8x32xf32>
    %87 = arith.mulf %86, %84 : vector<1x8x32xf32>
    %88 = vector.broadcast %83 : vector<1x1x32xf32> to vector<1x8x32xf32>
    %89 = arith.mulf %88, %85 : vector<1x8x32xf32>
    %90 = arith.subf %87, %89 : vector<1x8x32xf32>
    %91 = arith.addf %75, %90 : vector<1x8x32xf32>
    %92 = vector.broadcast %82 : vector<1x1x32xf32> to vector<1x8x32xf32>
    %93 = arith.mulf %92, %85 : vector<1x8x32xf32>
    %94 = vector.broadcast %83 : vector<1x1x32xf32> to vector<1x8x32xf32>
    %95 = arith.mulf %94, %84 : vector<1x8x32xf32>
    %96 = arith.addf %93, %95 : vector<1x8x32xf32>
    %97 = arith.addf %81, %96 : vector<1x8x32xf32>
    %c0_67 = arith.constant 0 : index
    %c6 = arith.constant 6 : index
    %c0_68 = arith.constant 0 : index
    %98 = vector.load %arg2[%c0_67, %c6, %c0_68] : memref<1x8x32xf32, #tpu.memory_space<vmem>>, vector<1x1x32xf32>
    %c0_69 = arith.constant 0 : index
    %c6_70 = arith.constant 6 : index
    %c0_71 = arith.constant 0 : index
    %99 = vector.load %arg3[%c0_69, %c6_70, %c0_71] : memref<1x8x32xf32, #tpu.memory_space<vmem>>, vector<1x1x32xf32>
    %c6_72 = arith.constant 6 : index
    %c0_73 = arith.constant 0 : index
    %c0_74 = arith.constant 0 : index
    %100 = vector.load %arg4[%c6_72, %c0_73, %c0_74] : memref<8x8x32xf32, #tpu.memory_space<vmem>>, vector<1x8x32xf32>
    %c6_75 = arith.constant 6 : index
    %c0_76 = arith.constant 0 : index
    %c0_77 = arith.constant 0 : index
    %101 = vector.load %arg5[%c6_75, %c0_76, %c0_77] : memref<8x8x32xf32, #tpu.memory_space<vmem>>, vector<1x8x32xf32>
    %102 = vector.broadcast %98 : vector<1x1x32xf32> to vector<1x8x32xf32>
    %103 = arith.mulf %102, %100 : vector<1x8x32xf32>
    %104 = vector.broadcast %99 : vector<1x1x32xf32> to vector<1x8x32xf32>
    %105 = arith.mulf %104, %101 : vector<1x8x32xf32>
    %106 = arith.subf %103, %105 : vector<1x8x32xf32>
    %107 = arith.addf %91, %106 : vector<1x8x32xf32>
    %108 = vector.broadcast %98 : vector<1x1x32xf32> to vector<1x8x32xf32>
    %109 = arith.mulf %108, %101 : vector<1x8x32xf32>
    %110 = vector.broadcast %99 : vector<1x1x32xf32> to vector<1x8x32xf32>
    %111 = arith.mulf %110, %100 : vector<1x8x32xf32>
    %112 = arith.addf %109, %111 : vector<1x8x32xf32>
    %113 = arith.addf %97, %112 : vector<1x8x32xf32>
    %c0_78 = arith.constant 0 : index
    %c7 = arith.constant 7 : index
    %c0_79 = arith.constant 0 : index
    %114 = vector.load %arg2[%c0_78, %c7, %c0_79] : memref<1x8x32xf32, #tpu.memory_space<vmem>>, vector<1x1x32xf32>
    %c0_80 = arith.constant 0 : index
    %c7_81 = arith.constant 7 : index
    %c0_82 = arith.constant 0 : index
    %115 = vector.load %arg3[%c0_80, %c7_81, %c0_82] : memref<1x8x32xf32, #tpu.memory_space<vmem>>, vector<1x1x32xf32>
    %c7_83 = arith.constant 7 : index
    %c0_84 = arith.constant 0 : index
    %c0_85 = arith.constant 0 : index
    %116 = vector.load %arg4[%c7_83, %c0_84, %c0_85] : memref<8x8x32xf32, #tpu.memory_space<vmem>>, vector<1x8x32xf32>
    %c7_86 = arith.constant 7 : index
    %c0_87 = arith.constant 0 : index
    %c0_88 = arith.constant 0 : index
    %117 = vector.load %arg5[%c7_86, %c0_87, %c0_88] : memref<8x8x32xf32, #tpu.memory_space<vmem>>, vector<1x8x32xf32>
    %118 = vector.broadcast %114 : vector<1x1x32xf32> to vector<1x8x32xf32>
    %119 = arith.mulf %118, %116 : vector<1x8x32xf32>
    %120 = vector.broadcast %115 : vector<1x1x32xf32> to vector<1x8x32xf32>
    %121 = arith.mulf %120, %117 : vector<1x8x32xf32>
    %122 = arith.subf %119, %121 : vector<1x8x32xf32>
    %123 = arith.addf %107, %122 : vector<1x8x32xf32>
    %124 = vector.broadcast %114 : vector<1x1x32xf32> to vector<1x8x32xf32>
    %125 = arith.mulf %124, %117 : vector<1x8x32xf32>
    %126 = vector.broadcast %115 : vector<1x1x32xf32> to vector<1x8x32xf32>
    %127 = arith.mulf %126, %116 : vector<1x8x32xf32>
    %128 = arith.addf %125, %127 : vector<1x8x32xf32>
    %129 = arith.addf %113, %128 : vector<1x8x32xf32>
    %c0_89 = arith.constant 0 : index
    %c0_90 = arith.constant 0 : index
    %c0_91 = arith.constant 0 : index
    %130 = vector.load %arg6[%c0_89, %c0_90, %c0_91] : memref<1x8x32xf32, #tpu.memory_space<vmem>>, vector<1x8x32xf32>
    tpu.vector_store %arg6[%c0_89, %c0_90, %c0_91], %123 {strides = array<i32>} : memref<1x8x32xf32, #tpu.memory_space<vmem>>, vector<1x8x32xf32>,
    %c0_92 = arith.constant 0 : index
    %c0_93 = arith.constant 0 : index
    %c0_94 = arith.constant 0 : index
    %131 = vector.load %arg7[%c0_92, %c0_93, %c0_94] : memref<1x8x32xf32, #tpu.memory_space<vmem>>, vector<1x8x32xf32>
    tpu.vector_store %arg7[%c0_92, %c0_93, %c0_94], %129 {strides = array<i32>} : memref<1x8x32xf32, #tpu.memory_space<vmem>>, vector<1x8x32xf32>,
    return
  }
  func.func @transform_0(%arg0: i32, %arg1: i32) -> (i32, i32, i32) {
    %c0_i32 = arith.constant 0 : i32
    %c0_i32_0 = arith.constant 0 : i32
    return %arg0, %c0_i32, %arg1 : i32, i32, i32
  }
  func.func @transform_1(%arg0: i32, %arg1: i32) -> (i32, i32, i32) {
    %c0_i32 = arith.constant 0 : i32
    %c0_i32_0 = arith.constant 0 : i32
    return %arg0, %c0_i32, %arg1 : i32, i32, i32
  }
  func.func @transform_2(%arg0: i32, %arg1: i32) -> (i32, i32, i32) {
    %c0_i32 = arith.constant 0 : i32
    %c0_i32_0 = arith.constant 0 : i32
    %c0_i32_1 = arith.constant 0 : i32
    return %c0_i32, %c0_i32_0, %arg1 : i32, i32, i32
  }
  func.func @transform_3(%arg0: i32, %arg1: i32) -> (i32, i32, i32) {
    %c0_i32 = arith.constant 0 : i32
    %c0_i32_0 = arith.constant 0 : i32
    %c0_i32_1 = arith.constant 0 : i32
    return %c0_i32, %c0_i32_0, %arg1 : i32, i32, i32
  }
  func.func @transform_4(%arg0: i32, %arg1: i32) -> (i32, i32, i32) {
    %c0_i32 = arith.constant 0 : i32
    %c0_i32_0 = arith.constant 0 : i32
    return %arg0, %c0_i32, %arg1 : i32, i32, i32
  }
  func.func @transform_5(%arg0: i32, %arg1: i32) -> (i32, i32, i32) {
    %c0_i32 = arith.constant 0 : i32
    %c0_i32_0 = arith.constant 0 : i32
    return %arg0, %c0_i32, %arg1 : i32, i32, i32
  }
}

module attributes {stable_mosaic.version = 11 : i64} {
  func.func @pw_residual_gelu_kernel(%arg0: i32, %arg1: i32, %arg2: memref<1x8x256xf32, #tpu.memory_space<vmem>>, %arg3: memref<1x8x256xf32, #tpu.memory_space<vmem>>, %arg4: memref<8x8xf32, #tpu.memory_space<vmem>>, %arg5: memref<8x1xf32, #tpu.memory_space<vmem>>, %arg6: memref<1x8x256xf32, #tpu.memory_space<vmem>>) attributes {dimension_semantics = [#tpu.dimension_semantics<parallel>, #tpu.dimension_semantics<parallel>], iteration_bounds = array<i64: 2, 1>, scalar_prefetch = 0 : i64, scratch_operands = 0 : i64, tpu.core_type = #tpu.core_type<tc>, window_params = [{transform_indices = @transform_0, window_bounds = array<i64: 1, 8, 256>}, {transform_indices = @transform_1, window_bounds = array<i64: 1, 8, 256>}, {pipeline_mode = #tpu.pipeline_mode<synchronous>, transform_indices = @transform_2, window_bounds = array<i64: 8, 8>}, {pipeline_mode = #tpu.pipeline_mode<synchronous>, transform_indices = @transform_3, window_bounds = array<i64: 8, 1>}, {transform_indices = @transform_4, window_bounds = array<i64: 1, 8, 256>}]} {
    %c0 = arith.constant 0 : index
    %c0_0 = arith.constant 0 : index
    %0 = vector.load %arg4[%c0, %c0_0] : memref<8x8xf32, #tpu.memory_space<vmem>>, vector<8x8xf32>
    %c0_1 = arith.constant 0 : index
    %c0_2 = arith.constant 0 : index
    %c0_3 = arith.constant 0 : index
    %1 = vector.load %arg2[%c0_1, %c0_2, %c0_3] : memref<1x8x256xf32, #tpu.memory_space<vmem>>, vector<1x8x256xf32>
    %2 = vector.shape_cast %1 : vector<1x8x256xf32> to vector<8x256xf32>
    %cst = arith.constant dense<0.000000e+00> : vector<8x256xf32>
    %3 = tpu.matmul %0, %2, %cst {dimension_numbers = #tpu.dot_dimension_numbers<[1], [0], [0], [1], [0, 0, 1, 1], [], []>, precision = #tpu.contract_precision<fp32>} : vector<8x8xf32>, vector<8x256xf32>, vector<8x256xf32> -> vector<8x256xf32>
    %c0_4 = arith.constant 0 : index
    %c0_5 = arith.constant 0 : index
    %4 = vector.load %arg5[%c0_4, %c0_5] : memref<8x1xf32, #tpu.memory_space<vmem>>, vector<8x1xf32>
    %5 = vector.broadcast %4 : vector<8x1xf32> to vector<8x256xf32>
    %6 = arith.addf %3, %5 : vector<8x256xf32>
    %c0_6 = arith.constant 0 : index
    %c0_7 = arith.constant 0 : index
    %c0_8 = arith.constant 0 : index
    %7 = vector.load %arg3[%c0_6, %c0_7, %c0_8] : memref<1x8x256xf32, #tpu.memory_space<vmem>>, vector<1x8x256xf32>
    %8 = vector.shape_cast %7 : vector<1x8x256xf32> to vector<8x256xf32>
    %9 = arith.addf %6, %8 : vector<8x256xf32>
    %cst_9 = arith.constant 5.000000e-01 : f32
    %10 = vector.broadcast %cst_9 : f32 to vector<8x256xf32>
    %11 = arith.mulf %10, %9 : vector<8x256xf32>
    %cst_10 = arith.constant 0.707106769 : f32
    %12 = vector.broadcast %cst_10 : f32 to vector<8x256xf32>
    %13 = arith.mulf %9, %12 : vector<8x256xf32>
    %14 = math.absf %13 : vector<8x256xf32>
    %cst_11 = arith.constant 0.327591091 : f32
    %15 = vector.broadcast %cst_11 : f32 to vector<8x256xf32>
    %16 = arith.mulf %15, %14 : vector<8x256xf32>
    %cst_12 = arith.constant 1.000000e+00 : f32
    %17 = vector.broadcast %cst_12 : f32 to vector<8x256xf32>
    %18 = arith.addf %17, %16 : vector<8x256xf32>
    %cst_13 = arith.constant 1.000000e+00 : f32
    %19 = vector.broadcast %cst_13 : f32 to vector<8x256xf32>
    %20 = arith.divf %19, %18 : vector<8x256xf32>
    %cst_14 = arith.constant 1.06140542 : f32
    %21 = vector.broadcast %cst_14 : f32 to vector<8x256xf32>
    %22 = arith.mulf %21, %20 : vector<8x256xf32>
    %cst_15 = arith.constant -1.45315206 : f32
    %23 = vector.broadcast %cst_15 : f32 to vector<8x256xf32>
    %24 = arith.addf %22, %23 : vector<8x256xf32>
    %25 = arith.mulf %24, %20 : vector<8x256xf32>
    %cst_16 = arith.constant 1.42141378 : f32
    %26 = vector.broadcast %cst_16 : f32 to vector<8x256xf32>
    %27 = arith.addf %25, %26 : vector<8x256xf32>
    %28 = arith.mulf %27, %20 : vector<8x256xf32>
    %cst_17 = arith.constant -0.284496725 : f32
    %29 = vector.broadcast %cst_17 : f32 to vector<8x256xf32>
    %30 = arith.addf %28, %29 : vector<8x256xf32>
    %31 = arith.mulf %30, %20 : vector<8x256xf32>
    %cst_18 = arith.constant 0.254829586 : f32
    %32 = vector.broadcast %cst_18 : f32 to vector<8x256xf32>
    %33 = arith.addf %31, %32 : vector<8x256xf32>
    %34 = arith.mulf %33, %20 : vector<8x256xf32>
    %cst_19 = arith.constant 0.000000e+00 : f32
    %35 = vector.broadcast %cst_19 : f32 to vector<8x256xf32>
    %36 = arith.subf %35, %14 : vector<8x256xf32>
    %37 = arith.mulf %36, %14 : vector<8x256xf32>
    %38 = math.exp %37 : vector<8x256xf32>
    %39 = arith.mulf %34, %38 : vector<8x256xf32>
    %cst_20 = arith.constant 1.000000e+00 : f32
    %40 = vector.broadcast %cst_20 : f32 to vector<8x256xf32>
    %41 = arith.subf %40, %39 : vector<8x256xf32>
    %cst_21 = arith.constant 0.000000e+00 : f32
    %42 = vector.broadcast %cst_21 : f32 to vector<8x256xf32>
    %43 = arith.cmpf oge, %13, %42 : vector<8x256xf32>
    %cst_22 = arith.constant 0.000000e+00 : f32
    %44 = vector.broadcast %cst_22 : f32 to vector<8x256xf32>
    %45 = arith.subf %44, %41 : vector<8x256xf32>
    %46 = arith.select %43, %41, %45 : vector<8x256xi1>, vector<8x256xf32>
    %cst_23 = arith.constant 1.000000e+00 : f32
    %47 = vector.broadcast %cst_23 : f32 to vector<8x256xf32>
    %48 = arith.addf %47, %46 : vector<8x256xf32>
    %49 = arith.mulf %11, %48 : vector<8x256xf32>
    %c0_24 = arith.constant 0 : index
    %c0_25 = arith.constant 0 : index
    %c0_26 = arith.constant 0 : index
    %50 = vector.load %arg6[%c0_24, %c0_25, %c0_26] : memref<1x8x256xf32, #tpu.memory_space<vmem>>, vector<1x8x256xf32>
    %51 = vector.shape_cast %50 : vector<1x8x256xf32> to vector<8x256xf32>
    %52 = vector.shape_cast %49 : vector<8x256xf32> to vector<1x8x256xf32>
    tpu.vector_store %arg6[%c0_24, %c0_25, %c0_26], %52 {strides = array<i32>} : memref<1x8x256xf32, #tpu.memory_space<vmem>>, vector<1x8x256xf32>,
    return
  }
  func.func @transform_0(%arg0: i32, %arg1: i32) -> (i32, i32, i32) {
    %c0_i32 = arith.constant 0 : i32
    %c0_i32_0 = arith.constant 0 : i32
    return %arg0, %c0_i32, %arg1 : i32, i32, i32
  }
  func.func @transform_1(%arg0: i32, %arg1: i32) -> (i32, i32, i32) {
    %c0_i32 = arith.constant 0 : i32
    %c0_i32_0 = arith.constant 0 : i32
    return %arg0, %c0_i32, %arg1 : i32, i32, i32
  }
  func.func @transform_2(%arg0: i32, %arg1: i32) -> (i32, i32) {
    %c0_i32 = arith.constant 0 : i32
    %c0_i32_0 = arith.constant 0 : i32
    %c0_i32_1 = arith.constant 0 : i32
    return %c0_i32, %c0_i32_0 : i32, i32
  }
  func.func @transform_3(%arg0: i32, %arg1: i32) -> (i32, i32) {
    %c0_i32 = arith.constant 0 : i32
    %c0_i32_0 = arith.constant 0 : i32
    %c0_i32_1 = arith.constant 0 : i32
    return %c0_i32, %c0_i32_0 : i32, i32
  }
  func.func @transform_4(%arg0: i32, %arg1: i32) -> (i32, i32, i32) {
    %c0_i32 = arith.constant 0 : i32
    %c0_i32_0 = arith.constant 0 : i32
    return %arg0, %c0_i32, %arg1 : i32, i32, i32
  }
}

</mosaic_0001>

<bundles_post_ra>
// kernel: fno_layer_forward.2
= control target key start
LH: loop header
LB: loop body
LE: loop exit
PB: predicated region body
PF: predicated region fallthrough
CT: control target
= control target key end

     0   :  { %s791_s18 = smov 0   ;;  %s793_s19 = smov 0   ;;  %s904_s0 = inlined_call_operand.vmem [shape: f32[2,8,32], index: 0, kind: input, shape index: {}]   ;;  %s905_s1 = inlined_call_operand.vmem [shape: f32[2,8,32], index: 1, kind: input, shape index: {}]   ;;  %s906_s2 = inlined_call_operand.vmem [shape: f32[8,8,32], index: 2, kind: input, shape index: {}]   ;;  %s907_s3 = inlined_call_operand.vmem [shape: f32[8,8,32], index: 3, kind: input, shape index: {}]   ;;  %s908_s4 = inlined_call_operand.vmem [shape: f32[2,8,32], index: 4, kind: output, shape index: {0}]   ;;  %s909_s5 = inlined_call_operand.vmem [shape: f32[2,8,32], index: 5, kind: output, shape index: {1}]  }
   0x1   :  { %s795_s20 = smov 0  }
   0x2 LB: > { %s28_s21 = sadd.s32 1, %s755_s19  ;;  %p676_p0 = scmp.ge.s32.totalorder %s759_s20, 1  ;;  %s759_s20 = sphi %s795_s20, %s16_s20   ;;  %s755_s19 = sphi %s793_s19, %s911_s19   ;;  %s751_s18 = sphi %s791_s18, %s910_s18  }
   0x3   : > { %p30_p1 = scmp.ge.s32.totalorder %s28_s21, 2  ;;  %p242_p2 = scmp.lt.s32.totalorder %s759_s20, 3 }
   0x5   : > { %s913_s21 = smov (%p30_p1, %s28_s21), 0  ;;  %p243_p3 = pnand %p676_p0, %p242_p2 }
   0x6   : > { %p296_p4 = scmp.lt.s32.totalorder (!%p243_p3), %s751_s18, 1 }
   0x7   : > { %246 = sbr.rel (%p243_p3) target bundleno = 42 (0x2a), region = 36 }
   0xc   : > { %s915_s18 = smov (!%p296_p4, %s751_s18), 1  ;;  %v334_v0 = vld [vmem:[%s906_s2] sm:$0xff]  ;;  %v683_v2 = vld [vmem:[%s906_s2 + $0x8] sm:$0xff]  ;;  %v687_v4 = vld [vmem:[%s906_s2 + $0x10] sm:$0xff]  ;;  %vm506_vm0 = vcmask 261120  }
   0xd   : > { %v335_v1 = vld [vmem:[%s907_s3] sm:$0xff]  ;;  %v684_v3 = vld [vmem:[%s907_s3 + $0x8] sm:$0xff]  ;;  %s821_s30 = sshll.u32 %s915_s18, 3  ;;  %v688_v5 = vld [vmem:[%s907_s3 + $0x10] sm:$0xff] }
   0xe   : > { %v691_v6 = vld [vmem:[%s906_s2 + $0x18] sm:$0xff]  ;;  %s836_s14 = scalar_lea.vmem %s904_s0, %s821_s30  ;;  %s842_s17 = scalar_lea.vmem %s905_s1, %s821_s30  ;;  %v695_v8 = vld [vmem:[%s906_s2 + $0x20] sm:$0xff]  ;;  %v699_v13 = vld [vmem:[%s906_s2 + $0x28] sm:$0xff] }
   0xf   : > { %v692_v7 = vld [vmem:[%s907_s3 + $0x18] sm:$0xff]  ;;  %v696_v9 = vld [vmem:[%s907_s3 + $0x20] sm:$0xff]  ;;  %v700_v14 = vld [vmem:[%s907_s3 + $0x28] sm:$0xff]  ;;  %s331_s23 = scalar_lea.vmem %s909_s5, %s821_s30 }
  0x10   : > { %v681_v10 = vld [vmem:[%s836_s14] ss:$0 sm:$0xff]  ;;  %v685_v12 = vld [vmem:[%s836_s14 + $0x1] ss:$0 sm:$0xff]  ;;  %v689_v19 = vld [vmem:[%s836_s14 + $0x2] ss:$0 sm:$0xff] }
  0x11   : > { %v682_v11 = vld [vmem:[%s842_s17] ss:$0 sm:$0xff]  ;;  %v340_v15 = vmul.f32 %v681_v10, %v334_v0  ;;  %v686_v17 = vld [vmem:[%s842_s17 + $0x1] ss:$0 sm:$0xff]  ;;  %v362_v18 = vmul.f32 %v685_v12, %v683_v2  ;;  %v690_v20 = vld [vmem:[%s842_s17 + $0x2] ss:$0 sm:$0xff]  ;;  %v384_v24 = vmul.f32 %v689_v19, %v687_v4  ;;  %v348_v31 = vmul.f32 %v681_v10, %v335_v1 }
  0x12   : > { %v345_v16 = vmul.f32 %v682_v11, %v335_v1  ;;  %v703_v21 = vld [vmem:[%s906_s2 + $0x30] sm:$0xff]  ;;  %v367_v23 = vmul.f32 %v686_v17, %v684_v3  ;;  %v389_v25 = vmul.f32 %v690_v20, %v688_v5  ;;  %v693_v26 = vld [vmem:[%s836_s14 + $0x3] ss:$0 sm:$0xff]  ;;  %v697_v28 = vld [vmem:[%s836_s14 + $0x4] ss:$0 sm:$0xff]  ;;  %v349_v45 = vmul.f32 %v682_v11, %v334_v0 }
  0x13   : > { %v704_v22 = vld [vmem:[%s907_s3 + $0x30] sm:$0xff]  ;;  %v694_v27 = vld [vmem:[%s842_s17 + $0x3] ss:$0 sm:$0xff]  ;;  %v707_v29 = vld [vmem:[%s906_s2 + $0x38] sm:$0xff]  ;;  %v406_v33 = vmul.f32 %v693_v26, %v691_v6  ;;  %v428_v36 = vmul.f32 %v697_v28, %v695_v8  ;;  %v370_v56 = vmul.f32 %v685_v12, %v684_v3  ;;  %v371_v59 = vmul.f32 %v686_v17, %v683_v2 }
  0x14   : > { %v708_v30 = vld [vmem:[%s907_s3 + $0x38] sm:$0xff]  ;;  %v346_v32 = vsub.f32 %v340_v15, %v345_v16  ;;  %v411_v34 = vmul.f32 %v694_v27, %v692_v7  ;;  %v698_v35 = vld [vmem:[%s842_s17 + $0x4] ss:$0 sm:$0xff]  ;;  %v701_v37 = vld [vmem:[%s836_s14 + $0x5] ss:$0 sm:$0xff]  ;;  %v368_v39 = vsub.f32 %v362_v18, %v367_v23  ;;  %v390_v40 = vsub.f32 %v384_v24, %v389_v25 }
  0x15   : > { %v702_v38 = vld [vmem:[%s842_s17 + $0x5] ss:$0 sm:$0xff]  ;;  %v433_v41 = vmul.f32 %v698_v35, %v696_v9  ;;  %v705_v42 = vld [vmem:[%s836_s14 + $0x6] ss:$0 sm:$0xff]  ;;  %v709_v44 = vld [vmem:[%s836_s14 + $0x7] ss:$0 sm:$0xff]  ;;  %v450_v46 = vmul.f32 %v701_v37, %v699_v13  ;;  %v350_v58 = vadd.f32 %v349_v45, %v348_v31  ;;  %v392_v60 = vmul.f32 %v689_v19, %v688_v5 }
  0x16   : > { %v706_v43 = vld [vmem:[%s842_s17 + $0x6] ss:$0 sm:$0xff]  ;;  %v455_v47 = vmul.f32 %v702_v38, %v700_v14  ;;  %v710_v48 = vld [vmem:[%s842_s17 + $0x7] ss:$0 sm:$0xff]  ;;  %v369_v49 = vadd.f32 %v368_v39, %v346_v32  ;;  %v412_v50 = vsub.f32 %v406_v33, %v411_v34  ;;  %v472_v51 = vmul.f32 %v705_v42, %v703_v21  ;;  %s324_s17 = scalar_lea.vmem %s908_s4, %s821_s30 }
  0x17   : > { %v477_v52 = vmul.f32 %v706_v43, %v704_v22  ;;  %v434_v53 = vsub.f32 %v428_v36, %v433_v41  ;;  %v494_v54 = vmul.f32 %v709_v44, %v707_v29  ;;  %v499_v55 = vmul.f32 %v710_v48, %v708_v30 }
  0x18   : > { %v391_v57 = vadd.f32 %v390_v40, %v369_v49  ;;  %v456_v61 = vsub.f32 %v450_v46, %v455_v47  ;;  %v393_v62 = vmul.f32 %v690_v20, %v687_v4  ;;  %v414_v63 = vmul.f32 %v693_v26, %v692_v7 }
  0x19   : > { %v415_v1 = vmul.f32 %v694_v27, %v691_v6  ;;  %v372_v10 = vadd.f32 %v371_v59, %v370_v56  ;;  %v436_v11 = vmul.f32 %v697_v28, %v696_v9  ;;  %v437_v15 = vmul.f32 %v698_v35, %v695_v8 }
  0x1a   : > { %v413_v0 = vadd.f32 %v412_v50, %v391_v57  ;;  %v394_v16 = vadd.f32 %v393_v62, %v392_v60  ;;  %v458_v18 = vmul.f32 %v701_v37, %v700_v14  ;;  %v459_v23 = vmul.f32 %v702_v38, %v699_v13 }
  0x1b   : > { %v478_v25 = vsub.f32 %v472_v51, %v477_v52  ;;  %v373_v32 = vadd.f32 %v372_v10, %v350_v58  ;;  %v416_v3 = vadd.f32 %v415_v1, %v414_v63  ;;  %v500_v12 = vsub.f32 %v494_v54, %v499_v55 }
  0x1c   : > { %v435_v24 = vadd.f32 %v434_v53, %v413_v0  ;;  %v480_v31 = vmul.f32 %v705_v42, %v704_v22  ;;  %v438_v17 = vadd.f32 %v437_v15, %v436_v11  ;;  %v481_v4 = vmul.f32 %v706_v43, %v703_v21 }
  0x1d   : > { %v395_v5 = vadd.f32 %v394_v16, %v373_v32  ;;  %v460_v6 = vadd.f32 %v459_v23, %v458_v18  ;;  %v502_v9 = vmul.f32 %v709_v44, %v708_v30  ;;  %v503_v8 = vmul.f32 %v710_v48, %v707_v29 }
  0x1e   : > { %v457_v2 = vadd.f32 %v456_v61, %v435_v24  ;;  %v482_v20 = vadd.f32 %v481_v4, %v480_v31 }
  0x1f   : > { %v417_v19 = vadd.f32 %v416_v3, %v395_v5  ;;  %v504_v26 = vadd.f32 %v503_v8, %v502_v9 }
  0x20   : > { %v479_v7 = vadd.f32 %v478_v25, %v457_v2 }
  0x21   : > { %v439_v14 = vadd.f32 %v438_v17, %v417_v19 }
  0x22   : > { %v501_v13 = vadd.f32 %v500_v12, %v479_v7 }
  0x23   : > { %v461_v22 = vadd.f32 %v460_v6, %v439_v14 }
  0x24   : > { %507 = vst.msk [vmem:[%s324_s17] sm:$0xff] %vm506_vm0, %v501_v13 }
  0x25   : > { %v483_v27 = vadd.f32 %v482_v20, %v461_v22 }
  0x27   : > { %v505_v21 = vadd.f32 %v504_v26, %v483_v27 }
  0x29   : > { %508 = vst.msk [vmem:[%s331_s23] sm:$0xff] %vm506_vm0, %v505_v21 }
  0x2a PF: > { %s16_s20 = sadd.s32 1, %s759_s20   ;;  %s910_s18 = smov %s755_s19 }
  0x2b   : > { %p13_p5 = scmp.ge.s32.totalorder %s16_s20, 4   ;;  %s911_s19 = smov %s913_s21 }
  0x2d   :  { %15 = sbr.rel (!%p13_p5) target bundleno = 2 (0x2), region = 101 }

// kernel: fno_layer_forward.3
= control target key start
LH: loop header
LB: loop body
LE: loop exit
PB: predicated region body
PF: predicated region fallthrough
CT: control target
= control target key end

     0   :  { %s1018_s15 = smov 0   ;;  %s1020_s16 = smov 0   ;;  %s1065_s0 = inlined_call_operand.vmem [shape: f32[2,8,256], index: 0, kind: input, shape index: {}]   ;;  %s1066_s1 = inlined_call_operand.vmem [shape: f32[2,8,256], index: 1, kind: input, shape index: {}]   ;;  %s1067_s2 = inlined_call_operand.vmem [shape: f32[8,8], index: 2, kind: input, shape index: {}]   ;;  %s1068_s3 = inlined_call_operand.vmem [shape: f32[8,1], index: 3, kind: input, shape index: {}]   ;;  %s1069_s4 = inlined_call_operand.vmem [shape: f32[2,8,256], index: 4, kind: output, shape index: {}]  }
   0x1   :  { %s1022_s17 = smov 0  }
   0x2 LB: > { %s26_s18 = sadd.s32 1, %s985_s16  ;;  %p920_p0 = scmp.ge.s32.totalorder %s989_s17, 1  ;;  %s989_s17 = sphi %s1022_s17, %s14_s17   ;;  %s985_s16 = sphi %s1020_s16, %s1071_s16   ;;  %s981_s15 = sphi %s1018_s15, %s1070_s15  }
   0x3   : > { %p28_p1 = scmp.ge.s32.totalorder %s26_s18, 2  ;;  %p200_p2 = scmp.lt.s32.totalorder %s989_s17, 3 }
   0x5   : > { %s1073_s18 = smov (%p28_p1, %s26_s18), 0  ;;  %p201_p3 = pnand %p920_p0, %p200_p2 }
   0x6   : > { %p244_p4 = scmp.lt.s32.totalorder (!%p201_p3), %s981_s15, 1 }
   0x7   : > { %204 = sbr.rel (%p201_p3) target bundleno = 288 (0x120), region = 36 }
   0xc   : > { %v273_v0 = vld [vmem:[%s1067_s2] sm:$0xff]  ;;  %vm282_vm0 = vcmask 64512   ;;  %v991_v2 = vmov 0.0   ;;  %s1075_s15 = smov (!%p244_p4, %s981_s15), 1  ;;  %v992_v5 = vmov 0  }
   0xd   : > { %v276_v1 = vld [vmem:[%s1068_s3] sm:$0xff]  ;;  %352 = vmatprep.mubr.f32.mxu0 %v991_v2  ;;  %v284_v3 = vsel %vm282_vm0, %v273_v0, 0  ;;  %438 = vmatprep.mubr.f32.mxu1 %v991_v2  ;;  %s1042_s23 = sshll.u32 %s1075_s15, 4 }
   0xe   : > { %v353_v4 = vand.u32 4294901760, %v284_v3  ;;  %958 = vset.pattern.permute.xlu0 %v992_v5  ;;  %s251_s26 = scalar_lea.vmem %s1065_s0, %s1042_s23  ;;  %s261_s29 = scalar_lea.vmem %s1066_s1, %s1042_s23 }
   0xf   : > { %279 = vperm.xlu0 %958, %v276_v1   ;;  %v275_v7 = vld [vmem:[%s251_s26 + $0x8] sm:$0xff]  ;;  %v274_v8 = vld [vmem:[%s251_s26] sm:$0xff]  ;;  %s271_s6 = scalar_lea.vmem %s1069_s4, %s1042_s23 }
  0x10   : > { %v354_v6 = vsub.f32 %v284_v3, %v353_v4  ;;  %v316_v10 = vand.u32 4294901760, %v275_v7  ;;  %v318_v11 = vand.u32 4294901760, %v274_v8  ;;  %v751_v43 = vld [vmem:[%s261_s29] sm:$0xff]  ;;  %v752_v47 = vld [vmem:[%s261_s29 + $0x8] sm:$0xff] }
  0x12   : > { %v355_v9 = vand.u32 4294901760, %v354_v6  ;;  %317 = vmatprep.subr.mxu0 %v316_v10  ;;  %v395_v13 = vsub.f32 %v275_v7, %v316_v10  ;;  %v401_v14 = vsub.f32 %v274_v8, %v318_v11 }
  0x13   : > { %319 = vmatpush1.msra.mxu0 %v318_v11 }
  0x14   : > { %v356_v12 = vsub.f32 %v354_v6, %v355_v9  ;;  %v396_v16 = vand.u32 4294901760, %v395_v13  ;;  %478 = vmatprep.subr.mxu0 %v395_v13  ;;  %v402_v17 = vand.u32 4294901760, %v401_v14 }
  0x16   : > { %v357_v15 = vand.u32 4294901760, %v356_v12  ;;  %v397_v18 = vsub.f32 %v395_v13, %v396_v16  ;;  %v403_v19 = vsub.f32 %v401_v14, %v402_v17 }
  0x18   : > { %358 = vmatmul.mubr.f32.vlgmr.msra.gmra.mxu0 %v357_v15  ;;  %v398_v20 = vand.u32 4294901760, %v397_v18  ;;  %v404_v21 = vand.u32 4294901760, %v403_v19 }
  0x19   : > { %481 = vmatpush1.msra.mxu0 %v401_v14  ;;  %514 = vmatprep.mubr.f32.mxu0 %v991_v2 }
  0x1a   : > { %632 = vmatprep.subr.mxu0 %v396_v16  ;;  %399 = vmatprep.subr.mxu1 %v398_v20 }
  0x1b   : > { %405 = vmatpush1.msra.mxu1 %v404_v21 }
  0x1c   : > { %517 = vmatmul.mubr.f32.vlgmr.msra.gmra.mxu0 %v354_v6  ;;  %440 = vmatmul.mubr.f32.vlgmr.msra.gmra.mxu1 %v353_v4 }
  0x1d   : > { %636 = vmatpush1.msra.mxu0 %v402_v17  ;;  %669 = vmatprep.mubr.f32.mxu0 %v991_v2 }
  0x1e   : > { %554 = vmatprep.subr.mxu1 %v316_v10  ;;  %589 = vmatprep.mubr.f32.mxu1 %v991_v2 }
  0x1f   : > { %556 = vmatpush1.msra.mxu1 %v318_v11 }
  0x20   : > { %708 = vmatprep.subr.mxu1 %v316_v10  ;;  %671 = vmatmul.mubr.f32.vlgmr.msra.gmra.mxu0 %v353_v4 }
  0x21   : > { %593 = vmatmul.mubr.f32.vlgmr.msra.gmra.mxu1 %v355_v9 }
  0x22   : > { %710 = vmatpush1.msra.mxu1 %v318_v11  ;;  %743 = vmatprep.mubr.f32.mxu1 %v991_v2 }
  0x25   : > { %745 = vmatmul.mubr.f32.vlgmr.msra.gmra.mxu1 %v353_v4 }
  0x8a   : > { %v280_v23 = vpop.permute.xlu0 %279 }
  0xd8   : > { %v359_v22 = vpop.f32.mrf.mxu0 }
  0xd9   : > { %v360_v25 = vadd.f32 %v359_v22, %v280_v23 }
  0xda   : > { %v361_v24 = vpop.f32.mrf.mxu0 }
  0xdb   : > { %v362_v29 = vadd.f32 %v361_v24, %v280_v23 }
  0xdc   : > { %v518_v26 = vpop.f32.mrf.mxu0  ;;  %v441_v27 = vpop.f32.mrf.mxu1 }
  0xdd   : > { %v442_v30 = vadd.f32 %v441_v27, %v360_v25 }
  0xde   : > { %v520_v28 = vpop.f32.mrf.mxu0  ;;  %v443_v31 = vpop.f32.mrf.mxu1 }
  0xdf   : > { %v519_v32 = vadd.f32 %v518_v26, %v442_v30  ;;  %v444_v33 = vadd.f32 %v443_v31, %v362_v29 }
  0xe0   : > { %v672_v35 = vpop.f32.mrf.mxu0 }
  0xe1   : > { %v594_v34 = vpop.f32.mrf.mxu1  ;;  %v521_v36 = vadd.f32 %v520_v28, %v444_v33 }
  0xe2   : > { %v595_v37 = vadd.f32 %v594_v34, %v519_v32  ;;  %v674_v41 = vpop.f32.mrf.mxu0 }
  0xe3   : > { %v596_v38 = vpop.f32.mrf.mxu1 }
  0xe4   : > { %v673_v39 = vadd.f32 %v672_v35, %v595_v37  ;;  %v597_v40 = vadd.f32 %v596_v38, %v521_v36 }
  0xe5   : > { %v746_v42 = vpop.f32.mrf.mxu1 }
  0xe6   : > { %v675_v44 = vadd.f32 %v674_v41, %v597_v40  ;;  %v747_v45 = vadd.f32 %v746_v42, %v673_v39 }
  0xe7   : > { %v748_v46 = vpop.f32.mrf.mxu1 }
  0xe8   : > { %v753_v48 = vadd.f32 %v751_v43, %v747_v45  ;;  %v749_v49 = vadd.f32 %v748_v46, %v675_v44 }
  0xea   : > { %v757_v50 = vmul.f32 0.70710677, %v753_v48  ;;  %v754_v51 = vadd.f32 %v752_v47, %v749_v49  ;;  %v755_v29 = vmul.f32 0.5, %v753_v48 }
  0xec   : > { %v759_v52 = vand.u32 2147483647, %v757_v50  ;;  %v758_v53 = vmul.f32 0.70710677, %v754_v51  ;;  %vm799_vm1 = vcmp.ge.f32.partialorder %v757_v50, 0.0  ;;  %v756_v34 = vmul.f32 0.5, %v754_v51 }
  0xee   : > { %v761_v54 = vmul.f32 0.3275911, %v759_v52  ;;  %v760_v55 = vand.u32 2147483647, %v758_v53  ;;  %v787_v59 = vsub.f32 0.0, %v759_v52  ;;  %vm800_vm2 = vcmp.ge.f32.partialorder %v758_v53, 0.0 }
  0xf0   : > { %v763_v56 = vadd.f32 1.0, %v761_v54  ;;  %v762_v57 = vmul.f32 0.3275911, %v760_v55  ;;  %v788_v60 = vsub.f32 0.0, %v760_v55  ;;  %v789_v61 = vmul.f32 %v787_v59, %v759_v52 }
  0xf2   : > { %959 = vrcp.f32 %v763_v56  ;;  %v764_v58 = vadd.f32 1.0, %v762_v57  ;;  %v790_v63 = vmul.f32 %v788_v60, %v760_v55  ;;  %v791_v1 = vmul.f32 1.442695, %v789_v61 }
  0xf4   : > { %961 = vrcp.f32 %v764_v58  ;;  %v793_v5 = vmul.f32 1.442695, %v790_v63 }
  0xf5   : > { %963 = vpow2.f32 %v791_v1 }
  0xf6   : > { %965 = vpow2.f32 %v793_v5 }
  0xff   : > { %v960_v62 = vpop.eup %959 }
 0x100   : > { %v769_v0 = vmul.f32 1.0614054, %v960_v62 }
 0x101   : > { %v962_v2 = vpop.eup %961 }
 0x102   : > { %v771_v3 = vadd.f32 -1.4531521, %v769_v0  ;;  %v770_v4 = vmul.f32 1.0614054, %v962_v2  ;;  %v964_v19 = vpop.eup %963 }
 0x103   : > { %v966_v23 = vpop.eup %965 }
 0x104   : > { %v773_v6 = vmul.f32 %v960_v62, %v771_v3  ;;  %v772_v7 = vadd.f32 -1.4531521, %v770_v4 }
 0x106   : > { %v775_v8 = vadd.f32 1.4214138, %v773_v6  ;;  %v774_v9 = vmul.f32 %v962_v2, %v772_v7 }
 0x108   : > { %v777_v10 = vmul.f32 %v960_v62, %v775_v8  ;;  %v776_v11 = vadd.f32 1.4214138, %v774_v9 }
 0x10a   : > { %v779_v12 = vadd.f32 -0.28449672, %v777_v10  ;;  %v778_v13 = vmul.f32 %v962_v2, %v776_v11 }
 0x10c   : > { %v781_v14 = vmul.f32 %v960_v62, %v779_v12  ;;  %v780_v15 = vadd.f32 -0.28449672, %v778_v13 }
 0x10e   : > { %v783_v16 = vadd.f32 0.2548296, %v781_v14  ;;  %v782_v17 = vmul.f32 %v962_v2, %v780_v15 }
 0x110   : > { %v785_v18 = vmul.f32 %v960_v62, %v783_v16  ;;  %v784_v20 = vadd.f32 0.2548296, %v782_v17 }
 0x112   : > { %v795_v21 = vmul.f32 %v964_v19, %v785_v18  ;;  %v786_v22 = vmul.f32 %v962_v2, %v784_v20 }
 0x114   : > { %v797_v24 = vsub.f32 1.0, %v795_v21  ;;  %v796_v25 = vmul.f32 %v966_v23, %v786_v22 }
 0x116   : > { %v801_v26 = vsub.f32 0.0, %v797_v24  ;;  %v798_v27 = vsub.f32 1.0, %v796_v25 }
 0x118   : > { %v803_v28 = vsel %vm799_vm1, %v797_v24, %v801_v26  ;;  %v802_v31 = vsub.f32 0.0, %v798_v27 }
 0x119   : > { %v805_v30 = vadd.f32 1.0, %v803_v28 }
 0x11a   : > { %v804_v33 = vsel %vm800_vm2, %v798_v27, %v802_v31 }
 0x11b   : > { %v807_v32 = vmul.f32 %v805_v30, %v755_v29  ;;  %v806_v35 = vadd.f32 1.0, %v804_v33 }
 0x11d   : > { %809 = vst [vmem:[%s271_s6] sm:$0xff] %v807_v32  ;;  %v808_v36 = vmul.f32 %v806_v35, %v756_v34 }
 0x11f   : > { %810 = vst [vmem:[%s271_s6 + $0x8] sm:$0xff] %v808_v36 }
 0x120 PF: > { %s14_s17 = sadd.s32 1, %s989_s17   ;;  %s1070_s15 = smov %s985_s16 }
 0x121   : > { %p11_p5 = scmp.ge.s32.totalorder %s14_s17, 4   ;;  %s1071_s16 = smov %s1073_s18 }
 0x123   :  { %13 = sbr.rel (!%p11_p5) target bundleno = 2 (0x2), region = 69 }

</bundles_post_ra>
